<compile_context>
chip_gen: v6e
topology: v6e:2x2x1
jax: 0.10.0
libtpu: 0.0.40
codegen_flags: <defaults>
</compile_context>

<pallas_src>
import jax
import jax.numpy as jnp
from jax import lax
from jax.experimental import pallas as pl
from jax.experimental.pallas import tpu as pltpu


def _sigmoid(x):
    # tanh-identity sigmoid: a single EUP op per element (vs exp + reciprocal).
    return 0.5 * (jnp.tanh(0.5 * x) + 1.0)


# -----------------------------------------------------------------------------
# Single-step cell kernel (matches CustomLSTMCell.forward exactly).
# -----------------------------------------------------------------------------
def _lstm_cell_kernel(x_ref, h_ref, c_ref, wih_ref, whh_ref, b_ref,
                      h_out_ref, c_out_ref):
    gates = (
        jnp.dot(x_ref[...], wih_ref[...], preferred_element_type=jnp.float32)
        + jnp.dot(h_ref[...], whh_ref[...], preferred_element_type=jnp.float32)
        + b_ref[...]
    )
    H = c_ref.shape[-1]
    i_g = _sigmoid(gates[:, 0 * H:1 * H])
    f_g = _sigmoid(gates[:, 1 * H:2 * H])
    g_g = jnp.tanh(gates[:, 2 * H:3 * H])
    o_g = _sigmoid(gates[:, 3 * H:4 * H])

    c_next = f_g * c_ref[...].astype(jnp.float32) + i_g * g_g
    h_out_ref[...] = (o_g * jnp.tanh(c_next)).astype(h_out_ref.dtype)
    c_out_ref[...] = c_next  # float32


# -----------------------------------------------------------------------------
# Sequence kernel: only the serial recurrence lives here.
#   x_proj (Tt, B, 4H) already holds x_t @ W_ih^T + (b_ih + b_hh), f32.
#   W_hh^T is resident in VMEM (constant index_map), h/c carried in VMEM scratch.
# -----------------------------------------------------------------------------
def _lstm_seq_kernel(xp_ref, whh_ref, h0_ref, c0_ref,
                     hseq_ref, cT_ref, h_sc, c_sc):
    t_blk = pl.program_id(0)
    Tt = xp_ref.shape[0]
    H = c_sc.shape[-1]

    @pl.when(t_blk == 0)
    def _():
        h_sc[...] = h0_ref[...].astype(h_sc.dtype)
        c_sc[...] = c0_ref[...].astype(jnp.float32)

    def step(t, carry):
        gates = xp_ref[t] + jnp.dot(h_sc[...], whh_ref[...],
                                    preferred_element_type=jnp.float32)
        i_g = _sigmoid(gates[:, 0 * H:1 * H])
        f_g = _sigmoid(gates[:, 1 * H:2 * H])
        g_g = jnp.tanh(gates[:, 2 * H:3 * H])
        o_g = _sigmoid(gates[:, 3 * H:4 * H])

        c_new = f_g * c_sc[...] + i_g * g_g
        h_new = o_g * jnp.tanh(c_new)
        c_sc[...] = c_new
        h_sc[...] = h_new.astype(h_sc.dtype)
        hseq_ref[t] = h_new.astype(hseq_ref.dtype)  # only store in the loop
        return carry

    lax.fori_loop(0, Tt, step, 0, unroll=True)

    # Final cell state written once, on the last grid step.
    @pl.when(t_blk == pl.num_programs(0) - 1)
    def _():
        cT_ref[...] = c_sc[...]


# -----------------------------------------------------------------------------
# Parameter preparation (do this ONCE, outside the per-call / per-step path).
# -----------------------------------------------------------------------------
def prepare_lstm_params(weight_ih, weight_hh, bias_ih, bias_hh,
                        *, compute_dtype=jnp.float32):
    """weight_ih: (4H, I), weight_hh: (4H, H), biases: (4H,).

    Returns (w_ih_t, w_hh_t, bias_fused):
      w_ih_t     : (I, 4H)  pre-transposed, in compute_dtype
      w_hh_t     : (H, 4H)  pre-transposed, in compute_dtype
      bias_fused : (1, 4H)  float32, b_ih + b_hh pre-folded
    Use compute_dtype=jnp.bfloat16 on v6e/v7x for full MXU rate; gate math and
    the cell state stay float32 either way.  (v7x has no int8 MXU; use bf16/fp8.)
    """
    H4 = weight_ih.shape[0]
    w_ih_t = jnp.asarray(weight_ih).T.astype(compute_dtype)
    w_hh_t = jnp.asarray(weight_hh).T.astype(compute_dtype)
    bias_fused = (jnp.asarray(bias_ih) + jnp.asarray(bias_hh)
                  ).reshape(1, H4).astype(jnp.float32)
    return w_ih_t, w_hh_t, bias_fused


# -----------------------------------------------------------------------------
# Wrappers.
# -----------------------------------------------------------------------------
def _full_spec(shape):
    # Whole-array block, constant index map (grid=(1,) or time grid).
    return pl.BlockSpec(shape, lambda *_: tuple(0 for _ in shape))


def lstm_cell_forward(x, h, c, params):
    """One LSTM cell step.  Returns (h_next, c_next); c_next is float32."""
    w_ih_t, w_hh_t, bias_fused = params
    B, I = x.shape
    H = h.shape[-1]
    assert w_ih_t.shape == (I, 4 * H) and w_hh_t.shape == (H, 4 * H)

    x_in = x.astype(w_ih_t.dtype)
    h_in = h.astype(w_hh_t.dtype)

    h_next, c_next = pl.pallas_call(
        _lstm_cell_kernel,
        out_shape=(
            jax.ShapeDtypeStruct((B, H), h.dtype),
            jax.ShapeDtypeStruct((B, H), jnp.float32),
        ),
        grid=(1,),
        in_specs=[
            _full_spec((B, I)),
            _full_spec((B, H)),
            _full_spec((B, H)),
            _full_spec((I, 4 * H)),
            _full_spec((H, 4 * H)),
            _full_spec((1, 4 * H)),
        ],
        out_specs=(
            _full_spec((B, H)),
            _full_spec((B, H)),
        ),
    )(x_in, h_in, c, w_ih_t, w_hh_t, bias_fused)
    return h_next, c_next


def lstm_sequence_forward(x_seq, h0, c0, params, *, time_block=16):
    """Run the cell over a (T, B, I) sequence.

    The input projection (the parallel part) is one large matmul outside the
    kernel; the Pallas kernel runs only the serial recurrence with W_hh and
    h/c resident in VMEM, chunking Tt time steps per grid iteration.

    Returns (h_seq (T,B,H), h_T (B,H), c_T (B,H) float32).
    """
    w_ih_t, w_hh_t, bias_fused = params
    T, B, I = x_seq.shape
    H = h0.shape[-1]
    assert w_ih_t.shape == (I, 4 * H) and w_hh_t.shape == (H, 4 * H)

    # Time-chunk size: largest divisor of T that is <= time_block.
    Tt = min(time_block, T)
    while T % Tt != 0:
        Tt -= 1

    # ---- Hoisted input projection: one big MXU matmul, f32 accumulation. ----
    x_proj = (
        jnp.dot(x_seq.reshape(T * B, I).astype(w_ih_t.dtype), w_ih_t,
                preferred_element_type=jnp.float32)
        + bias_fused
    ).reshape(T, B, 4 * H)

    h_sc_dtype = w_hh_t.dtype  # carry h in the matmul input dtype (no per-step cast)

    h_seq, c_T = pl.pallas_call(
        _lstm_seq_kernel,
        out_shape=(
            jax.ShapeDtypeStruct((T, B, H), h0.dtype),
            jax.ShapeDtypeStruct((B, H), jnp.float32),
        ),
        grid=(T // Tt,),
        in_specs=[
            pl.BlockSpec((Tt, B, 4 * H), lambda t: (t, 0, 0)),  # x_proj streamed
            pl.BlockSpec((H, 4 * H), lambda t: (0, 0)),         # W_hh^T resident
            pl.BlockSpec((B, H), lambda t: (0, 0)),             # h0
            pl.BlockSpec((B, H), lambda t: (0, 0)),             # c0
        ],
        out_specs=(
            pl.BlockSpec((Tt, B, H), lambda t: (t, 0, 0)),      # h per step
            pl.BlockSpec((B, H), lambda t: (0, 0)),             # final c (last step only)
        ),
        scratch_shapes=[
            pltpu.VMEM((B, H), h_sc_dtype),                     # h carry
            pltpu.VMEM((B, H), jnp.float32),                    # c carry
        ],
        compiler_params=pltpu.CompilerParams(
            dimension_semantics=("arbitrary",),                 # time is sequential
            vmem_limit_bytes=32 * 1024 * 1024,
        ),
    )(x_proj, w_hh_t, h0.astype(h_sc_dtype), c0)

    h_T = h_seq[-1]
    return h_seq, h_T, c_T


# -----------------------------------------------------------------------------
# Pure-JAX reference (mirrors the PyTorch module exactly).
# -----------------------------------------------------------------------------
def reference_lstm_cell(x, h, c, weight_ih, weight_hh, bias_ih, bias_hh):
    gates = x @ weight_ih.T + bias_ih + h @ weight_hh.T + bias_hh
    H = h.shape[-1]
    i_g = jax.nn.sigmoid(gates[:, 0 * H:1 * H])
    f_g = jax.nn.sigmoid(gates[:, 1 * H:2 * H])
    g_g = jnp.tanh(gates[:, 2 * H:3 * H])
    o_g = jax.nn.sigmoid(gates[:, 3 * H:4 * H])
    c_next = f_g * c + i_g * g_g
    h_next = o_g * jnp.tanh(c_next)
    return h_next, c_next


if __name__ == "__main__":
    batch = 8
    input_size = 16
    hidden_size = 32
    seq_len = 8

    key = jax.random.PRNGKey(0)
    k_wih, k_whh, k_bih, k_bhh, k_x, k_h, k_c, k_xs = jax.random.split(key, 8)

    # Parameter init mirroring reset_parameters(): U(-std, std), std = 1/sqrt(H)
    std = 1.0 / (hidden_size ** 0.5)
    weight_ih = jax.random.uniform(k_wih, (4 * hidden_size, input_size),
                                   minval=-std, maxval=std, dtype=jnp.float32)
    weight_hh = jax.random.uniform(k_whh, (4 * hidden_size, hidden_size),
                                   minval=-std, maxval=std, dtype=jnp.float32)
    bias_ih = jax.random.uniform(k_bih, (4 * hidden_size,),
                                 minval=-std, maxval=std, dtype=jnp.float32)
    bias_hh = jax.random.uniform(k_bhh, (4 * hidden_size,),
                                 minval=-std, maxval=std, dtype=jnp.float32)

    x = jax.random.normal(k_x, (batch, input_size), dtype=jnp.float32)
    h0 = jax.random.normal(k_h, (batch, hidden_size), dtype=jnp.float32)
    c0 = jax.random.normal(k_c, (batch, hidden_size), dtype=jnp.float32)
    x_seq = jax.random.normal(k_xs, (seq_len, batch, input_size), dtype=jnp.float32)

    # One-time parameter preparation (bf16 on v6e/v7x for MXU rate; f32 here to
    # keep tight test tolerances against the f32 reference).
    params = prepare_lstm_params(weight_ih, weight_hh, bias_ih, bias_hh,
                                 compute_dtype=jnp.float32)

    # --- single cell step ---
    h1, c1 = lstm_cell_forward(x, h0, c0, params)
    jax.block_until_ready((h1, c1))

    h_ref, c_ref = reference_lstm_cell(x, h0, c0, weight_ih, weight_hh,
                                       bias_ih, bias_hh)
    assert jnp.allclose(h1, h_ref, atol=1e-5, rtol=1e-5)
    assert jnp.allclose(c1, c_ref, atol=1e-5, rtol=1e-5)

    # --- fused sequence (serial recurrence inside one pallas_call) ---
    h_seq, hT, cT = lstm_sequence_forward(x_seq, h0, c0, params, time_block=16)
    jax.block_until_ready((h_seq, hT, cT))

    def _scan_step(carry, x_t):
        h, c = carry
        h2, c2 = reference_lstm_cell(x_t, h, c, weight_ih, weight_hh,
                                     bias_ih, bias_hh)
        return (h2, c2), h2

    (hT_r, cT_r), h_seq_r = jax.lax.scan(_scan_step, (h0, c0), x_seq)
    assert jnp.allclose(h_seq, h_seq_r, atol=1e-5, rtol=1e-5)
    assert jnp.allclose(hT, hT_r, atol=1e-5, rtol=1e-5)
    assert jnp.allclose(cT, cT_r, atol=1e-5, rtol=1e-5)

    print("KERNEL_OK")
</pallas_src>

<mosaic_0001>
module attributes {stable_mosaic.version = 11 : i64} {
  func.func @_lstm_cell_kernel(%arg0: i32, %arg1: memref<8x16xf32, #tpu.memory_space<vmem>>, %arg2: memref<8x32xf32, #tpu.memory_space<vmem>>, %arg3: memref<8x32xf32, #tpu.memory_space<vmem>>, %arg4: memref<16x128xf32, #tpu.memory_space<vmem>>, %arg5: memref<32x128xf32, #tpu.memory_space<vmem>>, %arg6: memref<1x128xf32, #tpu.memory_space<vmem>>, %arg7: memref<8x32xf32, #tpu.memory_space<vmem>>, %arg8: memref<8x32xf32, #tpu.memory_space<vmem>>) attributes {dimension_semantics = [#tpu.dimension_semantics<arbitrary>], iteration_bounds = array<i64: 1>, scalar_prefetch = 0 : i64, scratch_operands = 0 : i64, tpu.core_type = #tpu.core_type<tc>, window_params = [{pipeline_mode = #tpu.pipeline_mode<synchronous>, transform_indices = @transform_0, window_bounds = array<i64: 8, 16>}, {pipeline_mode = #tpu.pipeline_mode<synchronous>, transform_indices = @transform_1, window_bounds = array<i64: 8, 32>}, {pipeline_mode = #tpu.pipeline_mode<synchronous>, transform_indices = @transform_2, window_bounds = array<i64: 8, 32>}, {pipeline_mode = #tpu.pipeline_mode<synchronous>, transform_indices = @transform_3, window_bounds = array<i64: 16, 128>}, {pipeline_mode = #tpu.pipeline_mode<synchronous>, transform_indices = @transform_4, window_bounds = array<i64: 32, 128>}, {pipeline_mode = #tpu.pipeline_mode<synchronous>, transform_indices = @transform_5, window_bounds = array<i64: 1, 128>}, {pipeline_mode = #tpu.pipeline_mode<synchronous>, transform_indices = @transform_6, window_bounds = array<i64: 8, 32>}, {pipeline_mode = #tpu.pipeline_mode<synchronous>, transform_indices = @transform_7, window_bounds = array<i64: 8, 32>}]} {
    %c0 = arith.constant 0 : index
    %c0_0 = arith.constant 0 : index
    %0 = vector.load %arg1[%c0, %c0_0] : memref<8x16xf32, #tpu.memory_space<vmem>>, vector<8x16xf32>
    %c0_1 = arith.constant 0 : index
    %c0_2 = arith.constant 0 : index
    %1 = vector.load %arg4[%c0_1, %c0_2] : memref<16x128xf32, #tpu.memory_space<vmem>>, vector<16x128xf32>
    %cst = arith.constant dense<0.000000e+00> : vector<8x128xf32>
    %2 = tpu.matmul %0, %1, %cst {dimension_numbers = #tpu.dot_dimension_numbers<[1], [0], [0], [1], [0, 0, 1, 1], [], []>} : vector<8x16xf32>, vector<16x128xf32>, vector<8x128xf32> -> vector<8x128xf32>
    %c0_3 = arith.constant 0 : index
    %c0_4 = arith.constant 0 : index
    %3 = vector.load %arg2[%c0_3, %c0_4] : memref<8x32xf32, #tpu.memory_space<vmem>>, vector<8x32xf32>
    %c0_5 = arith.constant 0 : index
    %c0_6 = arith.constant 0 : index
    %4 = vector.load %arg5[%c0_5, %c0_6] : memref<32x128xf32, #tpu.memory_space<vmem>>, vector<32x128xf32>
    %cst_7 = arith.constant dense<0.000000e+00> : vector<8x128xf32>
    %5 = tpu.matmul %3, %4, %cst_7 {dimension_numbers = #tpu.dot_dimension_numbers<[1], [0], [0], [1], [0, 0, 1, 1], [], []>} : vector<8x32xf32>, vector<32x128xf32>, vector<8x128xf32> -> vector<8x128xf32>
    %6 = arith.addf %2, %5 : vector<8x128xf32>
    %c0_8 = arith.constant 0 : index
    %c0_9 = arith.constant 0 : index
    %7 = vector.load %arg6[%c0_8, %c0_9] : memref<1x128xf32, #tpu.memory_space<vmem>>, vector<1x128xf32>
    %8 = vector.broadcast %7 : vector<1x128xf32> to vector<8x128xf32>
    %9 = arith.addf %6, %8 : vector<8x128xf32>
    %10 = vector.extract_strided_slice %9 {offsets = [0, 0], sizes = [8, 32], strides = [1, 1]} : vector<8x128xf32> to vector<8x32xf32>
    %cst_10 = arith.constant 5.000000e-01 : f32
    %11 = vector.broadcast %cst_10 : f32 to vector<8x32xf32>
    %12 = arith.mulf %11, %10 : vector<8x32xf32>
    %13 = math.tanh %12 : vector<8x32xf32>
    %cst_11 = arith.constant 1.000000e+00 : f32
    %14 = vector.broadcast %cst_11 : f32 to vector<8x32xf32>
    %15 = arith.addf %13, %14 : vector<8x32xf32>
    %cst_12 = arith.constant 5.000000e-01 : f32
    %16 = vector.broadcast %cst_12 : f32 to vector<8x32xf32>
    %17 = arith.mulf %16, %15 : vector<8x32xf32>
    %18 = vector.extract_strided_slice %9 {offsets = [0, 32], sizes = [8, 32], strides = [1, 1]} : vector<8x128xf32> to vector<8x32xf32>
    %cst_13 = arith.constant 5.000000e-01 : f32
    %19 = vector.broadcast %cst_13 : f32 to vector<8x32xf32>
    %20 = arith.mulf %19, %18 : vector<8x32xf32>
    %21 = math.tanh %20 : vector<8x32xf32>
    %cst_14 = arith.constant 1.000000e+00 : f32
    %22 = vector.broadcast %cst_14 : f32 to vector<8x32xf32>
    %23 = arith.addf %21, %22 : vector<8x32xf32>
    %cst_15 = arith.constant 5.000000e-01 : f32
    %24 = vector.broadcast %cst_15 : f32 to vector<8x32xf32>
    %25 = arith.mulf %24, %23 : vector<8x32xf32>
    %26 = vector.extract_strided_slice %9 {offsets = [0, 64], sizes = [8, 32], strides = [1, 1]} : vector<8x128xf32> to vector<8x32xf32>
    %27 = math.tanh %26 : vector<8x32xf32>
    %28 = vector.extract_strided_slice %9 {offsets = [0, 96], sizes = [8, 32], strides = [1, 1]} : vector<8x128xf32> to vector<8x32xf32>
    %cst_16 = arith.constant 5.000000e-01 : f32
    %29 = vector.broadcast %cst_16 : f32 to vector<8x32xf32>
    %30 = arith.mulf %29, %28 : vector<8x32xf32>
    %31 = math.tanh %30 : vector<8x32xf32>
    %cst_17 = arith.constant 1.000000e+00 : f32
    %32 = vector.broadcast %cst_17 : f32 to vector<8x32xf32>
    %33 = arith.addf %31, %32 : vector<8x32xf32>
    %cst_18 = arith.constant 5.000000e-01 : f32
    %34 = vector.broadcast %cst_18 : f32 to vector<8x32xf32>
    %35 = arith.mulf %34, %33 : vector<8x32xf32>
    %c0_19 = arith.constant 0 : index
    %c0_20 = arith.constant 0 : index
    %36 = vector.load %arg3[%c0_19, %c0_20] : memref<8x32xf32, #tpu.memory_space<vmem>>, vector<8x32xf32>
    %37 = arith.mulf %25, %36 : vector<8x32xf32>
    %38 = arith.mulf %17, %27 : vector<8x32xf32>
    %39 = arith.addf %37, %38 : vector<8x32xf32>
    %40 = math.tanh %39 : vector<8x32xf32>
    %41 = arith.mulf %35, %40 : vector<8x32xf32>
    %c0_21 = arith.constant 0 : index
    %c0_22 = arith.constant 0 : index
    %42 = vector.load %arg7[%c0_21, %c0_22] : memref<8x32xf32, #tpu.memory_space<vmem>>, vector<8x32xf32>
    tpu.vector_store %arg7[%c0_21, %c0_22], %41 {strides = array<i32>} : memref<8x32xf32, #tpu.memory_space<vmem>>, vector<8x32xf32>,
    %c0_23 = arith.constant 0 : index
    %c0_24 = arith.constant 0 : index
    %43 = vector.load %arg8[%c0_23, %c0_24] : memref<8x32xf32, #tpu.memory_space<vmem>>, vector<8x32xf32>
    tpu.vector_store %arg8[%c0_23, %c0_24], %39 {strides = array<i32>} : memref<8x32xf32, #tpu.memory_space<vmem>>, vector<8x32xf32>,
    return
  }
  func.func @transform_0(%arg0: i32) -> (i32, i32) {
    %c0_i32 = arith.constant 0 : i32
    %c0_i32_0 = arith.constant 0 : i32
    %c0_i32_1 = arith.constant 0 : i32
    return %c0_i32, %c0_i32_0 : i32, i32
  }
  func.func @transform_1(%arg0: i32) -> (i32, i32) {
    %c0_i32 = arith.constant 0 : i32
    %c0_i32_0 = arith.constant 0 : i32
    %c0_i32_1 = arith.constant 0 : i32
    return %c0_i32, %c0_i32_0 : i32, i32
  }
  func.func @transform_2(%arg0: i32) -> (i32, i32) {
    %c0_i32 = arith.constant 0 : i32
    %c0_i32_0 = arith.constant 0 : i32
    %c0_i32_1 = arith.constant 0 : i32
    return %c0_i32, %c0_i32_0 : i32, i32
  }
  func.func @transform_3(%arg0: i32) -> (i32, i32) {
    %c0_i32 = arith.constant 0 : i32
    %c0_i32_0 = arith.constant 0 : i32
    %c0_i32_1 = arith.constant 0 : i32
    return %c0_i32, %c0_i32_0 : i32, i32
  }
  func.func @transform_4(%arg0: i32) -> (i32, i32) {
    %c0_i32 = arith.constant 0 : i32
    %c0_i32_0 = arith.constant 0 : i32
    %c0_i32_1 = arith.constant 0 : i32
    return %c0_i32, %c0_i32_0 : i32, i32
  }
  func.func @transform_5(%arg0: i32) -> (i32, i32) {
    %c0_i32 = arith.constant 0 : i32
    %c0_i32_0 = arith.constant 0 : i32
    %c0_i32_1 = arith.constant 0 : i32
    return %c0_i32, %c0_i32_0 : i32, i32
  }
  func.func @transform_6(%arg0: i32) -> (i32, i32) {
    %c0_i32 = arith.constant 0 : i32
    %c0_i32_0 = arith.constant 0 : i32
    %c0_i32_1 = arith.constant 0 : i32
    return %c0_i32, %c0_i32_0 : i32, i32
  }
  func.func @transform_7(%arg0: i32) -> (i32, i32) {
    %c0_i32 = arith.constant 0 : i32
    %c0_i32_0 = arith.constant 0 : i32
    %c0_i32_1 = arith.constant 0 : i32
    return %c0_i32, %c0_i32_0 : i32, i32
  }
}

</mosaic_0001>

<bundles_post_ra>
// kernel: tpu_custom_call.1
= control target key start
LH: loop header
LB: loop body
LE: loop exit
PB: predicated region body
PF: predicated region fallthrough
CT: control target
= control target key end

     0   :  { %13 = vsyncpa [#allocation3], 0  ;;  %s607_s0 = inlined_call_operand.hbm [shape: f32[8,16], index: 0, kind: input, shape index: {}]   ;;  %s608_s1 = inlined_call_operand.hbm [shape: f32[8,32], index: 1, kind: input, shape index: {}]   ;;  %s609_s2 = inlined_call_operand.hbm [shape: f32[8,32], index: 2, kind: input, shape index: {}]   ;;  %s610_s3 = inlined_call_operand.hbm [shape: f32[16,128], index: 3, kind: input, shape index: {}]   ;;  %s611_s4 = inlined_call_operand.hbm [shape: f32[32,128], index: 4, kind: input, shape index: {}]   ;;  %s612_s5 = inlined_call_operand.vmem [shape: f32[1,128], index: 5, kind: input, shape index: {}]   ;;  %s613_s6 = inlined_call_operand.hbm [shape: f32[8,32], index: 6, kind: output, shape index: {0}]   ;;  %s614_s7 = inlined_call_operand.hbm [shape: f32[8,32], index: 7, kind: output, shape index: {1}]  }
   0x1   :  { %14 = vsyncpa [#allocation6], 0 }
   0x2   :  { %15 = vsyncpa [#allocation9], 0 }
   0x3   :  { %16 = vsyncpa [#allocation4], 0 }
   0x4   :  { %17 = vsyncpa [#allocation13], 0  ;;  %s520_s24 = smov [#allocation5]   ;;  %s521_s26 = smov [#allocation8]  }
   0x5   :  { %s34_s25 = sshll.u32 %s520_s24, 4  ;;  %s53_s27 = sshll.u32 %s521_s26, 4  ;;  %s35_s25 = int_to_ptr.vmem [resolvable:$true] %s34_s25  ;;  %s54_s27 = int_to_ptr.vmem [resolvable:$true] %s53_s27 }
   0x6   :  { %s378_s28 = scalar_lea.vmem %s35_s25, 128  ;;  %p383_p1 = scmp.lt.s32.totalorder %s35_s25, %s35_s25 }
   0x7   :  { %p379_p0 = scmp.ne.s32.totalorder %s35_s25, %s378_s28  ;;  %p384_p2 = scmp.lt.s32.totalorder %s378_s28, %s378_s28 }
   0x9   :  { %p385_p3 = por %p384_p2, %p383_p1 }
   0xb   :  { %p386_p4 = pnand %p385_p3, %p379_p0 }
   0xd   :  { %389 = shalt.err (!%p386_p4)
}
   0xe   :  { %37 = dma.hbm_to_vmem [thread:$0]  %s608_s1, 128, %s35_s25, [#allocation6]  }
   0xf   :  { %s398_s8 = scalar_lea.vmem %s54_s27, 256  ;;  %p403_p6 = scmp.lt.s32.totalorder %s54_s27, %s54_s27 }
  0x10   :  { %p399_p5 = scmp.ne.s32.totalorder %s54_s27, %s398_s8  ;;  %p404_p7 = scmp.lt.s32.totalorder %s398_s8, %s398_s8 }
  0x12   :  { %p405_p8 = por %p404_p7, %p403_p6 }
  0x14   :  { %p406_p9 = pnand %p405_p8, %p399_p5 }
  0x16   :  { %409 = shalt.err (!%p406_p9)
}
  0x17   :  { %s522_s9 = smov 128   ;;  %s523_s10 = smov 8  }
  0x18   :  { %59 = dma.hbm_to_vmem [thread:$0]  %s610_s3, 256, %s54_s27, [#allocation9], %s522_s9, %s522_s9, %s523_s10  }
  0x19   :  { %s524_s13 = smov [#allocation2]   ;;  %s525_s15 = smov [#allocation7]  }
  0x1a   :  { %s24_s14 = sshll.u32 %s524_s13, 4  ;;  %s44_s1 = sshll.u32 %s525_s15, 4  ;;  %s25_s14 = int_to_ptr.vmem [resolvable:$true] %s24_s14  ;;  %s45_s1 = int_to_ptr.vmem [resolvable:$true] %s44_s1 }
  0x1b   :  { %s418_s16 = scalar_lea.vmem %s25_s14, 128  ;;  %p423_p11 = scmp.lt.s32.totalorder %s25_s14, %s25_s14 }
  0x1c   :  { %p419_p10 = scmp.ne.s32.totalorder %s25_s14, %s418_s16  ;;  %p424_p12 = scmp.lt.s32.totalorder %s418_s16, %s418_s16 }
  0x1e   :  { %p425_p13 = por %p424_p12, %p423_p11 }
  0x20   :  { %p426_p0 = pnand %p425_p13, %p419_p10 }
  0x22   :  { %429 = shalt.err (!%p426_p0)
}
  0x23   :  { %27 = dma.hbm_to_vmem [thread:$0]  %s607_s0, 128, %s25_s14, [#allocation3]  }
  0x24   :  { %s438_s19 = scalar_lea.vmem %s45_s1, 128  ;;  %p443_p2 = scmp.lt.s32.totalorder %s45_s1, %s45_s1 }
  0x25   :  { %p439_p1 = scmp.ne.s32.totalorder %s45_s1, %s438_s19  ;;  %p444_p3 = scmp.lt.s32.totalorder %s438_s19, %s438_s19 }
  0x27   :  { %p445_p4 = por %p444_p3, %p443_p2 }
  0x29   :  { %p446_p5 = pnand %p445_p4, %p439_p1 }
  0x2b   :  { %449 = shalt.err (!%p446_p5)
}
  0x2c   :  { %47 = dma.hbm_to_vmem [thread:$0]  %s609_s2, 128, %s45_s1, [#allocation6]  }
  0x2d   :  { %s526_s21 = smov [#allocation10]  }
  0x2e   :  { %s65_s22 = sshll.u32 %s526_s21, 4  ;;  %s66_s22 = int_to_ptr.vmem [resolvable:$true] %s65_s22 }
  0x2f   :  { %s458_s23 = scalar_lea.vmem %s66_s22, 512  ;;  %p463_p7 = scmp.lt.s32.totalorder %s66_s22, %s66_s22 }
  0x30   :  { %p459_p6 = scmp.ne.s32.totalorder %s66_s22, %s458_s23  ;;  %p464_p8 = scmp.lt.s32.totalorder %s458_s23, %s458_s23 }
  0x32   :  { %p465_p9 = por %p464_p8, %p463_p7 }
  0x34   :  { %p466_p10 = pnand %p465_p9, %p459_p6 }
  0x36   :  { %469 = shalt.err (!%p466_p10)
}
  0x37   :  { %71 = dma.hbm_to_vmem [thread:$0]  %s611_s4, 512, %s66_s22, [#allocation9], %s522_s9, %s522_s9, %s523_s10  }
  0x38   :  { %510 = dma.done.wait [#allocation3], 128  }
  0x39   :  { %511 = vsyncadd [#allocation3], 4294967168 }
  0x3a   :  { %512 = dma.done.wait [#allocation6], 256  }
  0x3b   :  { %513 = vsyncadd [#allocation6], 4294967040 }
  0x3c   :  { %514 = dma.done.wait [#allocation9], 768  }
  0x3d   :  { %515 = vsyncadd [#allocation9], 4294966528  ;;  %v527_v0 = vmov 0.0   ;;  %vm528_vm0 = vmmov 0   ;;  %v96_v1 = vld [vmem:[#allocation10 + $0x18] sm:$0xff]  ;;  %v95_v2 = vld [vmem:[#allocation10 + $0x10] sm:$0xff] }
  0x3e   :  { %332 = vmatprep.subr.mxu0 %v527_v0  ;;  %343 = vmatprep.subr.mxu1 %v527_v0  ;;  %v91_v3 = vld [vmem:[#allocation8 + $0x8] sm:$0xff]  ;;  %v90_v4 = vld [vmem:[#allocation8] sm:$0xff]  ;;  %vm171_vm1 = vcmask 130048   ;;  %v94_v6 = vld [vmem:[#allocation10 + $0x8] sm:$0xff]  ;;  %vm97_vm2 = vcmask 261120   ;;  %s529_s25 = smov 64  }
  0x3f   :  { %347 = vmatprep.mubr.msk.f32.mxu1 %vm528_vm0, %v527_v0  ;;  %340 = vmatprep.mubr.msk.f32.mxu0 %vm528_vm0, %v527_v0  ;;  %v89_v5 = vld [vmem:[#allocation2] sm:$0xff]  ;;  %v93_v7 = vld [vmem:[#allocation10] sm:$0xff]  ;;  %v258_v17 = vld [vmem:[#allocation7] sm:$0xff]  ;;  %s530_s26 = smov 32   ;;  %s532_s27 = smov [#allocation12]  }
  0x40   :  { %333 = vmatpush3.msra.mxu0 %v96_v1  ;;  %344 = vmatpush3.msra.mxu1 %v91_v3  ;;  %v92_v8 = vld [vmem:[#allocation5] sm:$0xff]  ;;  %v323_v12 = vld [vmem:[%s612_s5] ss:$0 sm:$0xff]  ;;  %s531_s5 = smov 96   ;;  %s306_s28 = sshll.u32 %s532_s27, 4  ;;  %s307_s28 = int_to_ptr.vmem [resolvable:$true] %s306_s28 }
  0x41   :  { %334 = vmatprep.subr.mxu0 %v527_v0  ;;  %345 = vmatprep.subr.mxu1 %v527_v0  ;;  %s470_s29 = scalar_lea.vmem %s307_s28, 128  ;;  %p475_p12 = scmp.lt.s32.totalorder %s307_s28, %s307_s28 }
  0x42   :  { %335 = vmatpush3.msra.mxu0 %v95_v2  ;;  %346 = vmatpush3.msra.mxu1 %v90_v4  ;;  %p471_p11 = scmp.ne.s32.totalorder %s307_s28, %s470_s29  ;;  %p476_p13 = scmp.lt.s32.totalorder %s470_s29, %s470_s29 }
  0x43   :  { %336 = vmatprep.subr.mxu0 %v527_v0  ;;  %348 = vmatmul.mubr.msk.f32.vlgmr.msra.gmra.mxu1 %vm171_vm1, %v89_v5 }
  0x44   :  { %337 = vmatpush3.msra.mxu0 %v94_v6  ;;  %p477_p0 = por %p476_p13, %p475_p12 }
  0x45   :  { %338 = vmatprep.subr.mxu0 %v527_v0 }
  0x46   :  { %339 = vmatpush3.msra.mxu0 %v93_v7  ;;  %p478_p1 = pnand %p477_p0, %p471_p11 }
  0x47   :  { %341 = vmatmul.mubr.msk.f32.vlgmr.msra.gmra.mxu0 %vm97_vm2, %v92_v8 }
 0x103   :  { %v241_v9 = vpop.f32.mrf.mxu1 }
 0x105   :  { %v349_v10 = vpop.f32.mrf.mxu1 }
 0x107   :  { %v167_v11 = vpop.f32.mrf.mxu0 }
 0x108   :  { %v242_v13 = vadd.f32 %v241_v9, %v167_v11 }
 0x109   :  { %v342_v14 = vpop.f32.mrf.mxu0 }
 0x10a   :  { %v252_v15 = vadd.f32 %v323_v12, %v242_v13 }
 0x10c   :  { %364 = vtanh.f32 %v252_v15  ;;  %v253_v18 = vmul.f32 0.5, %v252_v15 }
 0x10e   :  { %366 = vtanh.f32 %v253_v18 }
 0x119   :  { %v365_v16 = vpop.eup %364 }
 0x11a   :  { %265 = vrot.lane.b32.xlu0 %v365_v16, %s529_s25 }
 0x11b   :  { %v367_v19 = vpop.eup %366 }
 0x11c   :  { %v255_v20 = vadd.f32 1.0, %v367_v19 }
 0x11e   :  { %260 = vrot.lane.b32.xlu0 %v258_v17, %s530_s26  ;;  %v256_v21 = vmul.f32 0.5, %v255_v20 }
 0x18c   :  { %v266_v22 = vpop.permute.xlu0 %265 }
 0x18d   :  { %v268_v23 = vmul.f32 %v266_v22, %v256_v21 }
 0x18f   :  { %270 = vrot.lane.b32.xlu1 %v268_v23, %s530_s26 }
 0x190   :  { %v261_v24 = vpop.permute.xlu0 %260 }
 0x191   :  { %v263_v25 = vmul.f32 %v261_v24, %v256_v21 }
 0x201   :  { %v271_v26 = vpop.permute.xlu1 %270 }
 0x202   :  { %v273_v27 = vadd.f32 %v271_v26, %v263_v25 }
 0x204   :  { %368 = vtanh.f32 %v273_v27 }
 0x211   :  { %v369_v28 = vpop.eup %368 }
 0x212   :  { %276 = vrot.lane.b32.xlu1 %v369_v28, %s529_s25 }
 0x216   :  { %286 = vrot.lane.b32.xlu1 %v273_v27, %s531_s5 }
 0x284   :  { %v277_v29 = vpop.permute.xlu1 %276 }
 0x285   :  { %v279_v30 = vmul.f32 %v277_v29, %v256_v21 }
 0x287   :  { %281 = vrot.lane.b32.xlu0 %v279_v30, %s530_s26 }
 0x288   :  { %v287_v31 = vpop.permute.xlu1 %286 }
 0x289   :  { %289 = vst.msk [vmem:[#allocation12] sm:$0xff] %vm97_vm2, %v287_v31 }
 0x28a   :  { %481 = shalt.err (!%p478_p1)
}
 0x28b   :  { %309 = dma.vmem_to_hbm [thread:$0]  %s307_s28, 128, %s614_s7, [#allocation13]  }
 0x28c   :  { %s533_s9 = smov [#allocation11]  }
 0x28d   :  { %s296_s10 = sshll.u32 %s533_s9, 4  ;;  %s297_s10 = int_to_ptr.vmem [resolvable:$true] %s296_s10 }
 0x28e   :  { %s490_s11 = scalar_lea.vmem %s297_s10, 128  ;;  %p495_p3 = scmp.lt.s32.totalorder %s297_s10, %s297_s10 }
 0x28f   :  { %p491_p2 = scmp.ne.s32.totalorder %s297_s10, %s490_s11  ;;  %p496_p4 = scmp.lt.s32.totalorder %s490_s11, %s490_s11 }
 0x291   :  { %p497_p5 = por %p496_p4, %p495_p3 }
 0x293   :  { %p498_p6 = pnand %p497_p5, %p491_p2 }
 0x2f9   :  { %v282_v32 = vpop.permute.xlu0 %281 }
 0x2fa   :  { %284 = vst.msk [vmem:[#allocation11] sm:$0xff] %vm97_vm2, %v282_v32 }
 0x2fb   :  { %501 = shalt.err (!%p498_p6)
}
 0x2fc   :  { %299 = dma.vmem_to_hbm [thread:$0]  %s297_s10, 128, %s613_s6, [#allocation4]  }
 0x2fd   :  { %516 = dma.done.wait [#allocation4], 128  }
 0x2fe   :  { %517 = vsyncadd [#allocation4], 4294967168 }
 0x2ff   :  { %518 = dma.done.wait [#allocation13], 128  }
 0x300   :  { %519 = vsyncadd [#allocation13], 4294967168 }
 0x301   :  { %316 = vsyncpa [#allocation3], 1 }
 0x302   :  { %317 = vsyncpa [#allocation6], 1 }
 0x303   :  { %318 = vsyncpa [#allocation9], 1 }
 0x304   :  { %319 = vsyncpa [#allocation4], 1 }
 0x305   :  { %320 = vsyncpa [#allocation13], 1 }

</bundles_post_ra>
